<compile_context>
chip_gen: v7x
topology: tpu7x:2x2x1
jax: 0.10.0
libtpu: 0.0.40
codegen_flags: <defaults>
</compile_context>

<pallas_src>
import functools

import numpy as np
import jax
import jax.numpy as jnp
from jax.experimental import pallas as pl
from jax.experimental.pallas import tpu as pltpu


def make_kernel(k):
    """Mirror of the PyTorch make_kernel: 1-D taps -> outer product, / sum."""
    k = np.asarray(k, dtype=np.float32)
    if k.ndim == 1:
        k = k[None, :] * k[:, None]
    k = k / k.sum()
    return k


def _cdiv(a, b):
    return -(-a // b)


def _separable_taps(blur_taps, upsample_factor):
    """Factor the (flipped) blur kernel into 1-D row / column taps.

    upfirdn2d conv2d's with flip(K); with K = outer(ky, kx) this is
      out[h, w] = sum_i ty[i] * (sum_j tx[j] * xpad[h + i, w + j])
    with ty = flip(ky), tx = flip(kx).  Returned as python-float tuples so the
    taps are baked into the kernel as compile-time constants.
    """
    k = np.asarray(blur_taps, dtype=np.float64)
    if k.ndim == 1:
        k1 = k / k.sum()
        ky, kx = k1, k1
    elif k.ndim == 2:
        k2 = k / k.sum()
        u, s, vt = np.linalg.svd(k2)
        if s.size > 1 and s[1] > 1e-6 * max(s[0], 1e-30):
            # TODO(synk): non-separable 2-D FIR kernels need the generic kh*kw
            # tap loop; Blur only ever uses 1-D (separable) taps.
            raise NotImplementedError("only separable blur kernels supported")
        ky = u[:, 0] * np.sqrt(s[0])
        kx = vt[0, :] * np.sqrt(s[0])
        if ky.sum() < 0.0:
            ky, kx = -ky, -kx
    else:
        raise ValueError("blur kernel must be 1-D or 2-D")
    ky = ky * float(upsample_factor) ** 2
    ty = tuple(float(v) for v in ky[::-1])
    tx = tuple(float(v) for v in kx[::-1])
    return tx, ty


def _blur_kernel(x_ref, o_ref, hbuf_ref, *, tx, ty, px0, px1, py0,
                 in_h, in_w, out_w, tile_oh, reuse_rows):
    # x_ref    : (in_h, in_w, tile_bc)       full-height input slab (resident)
    # o_ref    : (tile_oh, out_w, tile_bc)   one tile of output rows
    # hbuf_ref : (hbuf_rows, out_w, tile_bc) f32 row-pass result with H halo
    tb = x_ref.shape[-1]
    n_rows = hbuf_ref.shape[0]

    def row_pass():
        xv = x_ref[...].astype(jnp.float32)                 # (in_h, in_w, tb)
        # W halo built in registers (no padded staging buffer, no masked
        # column-strip stores): one zero-concat along the sublane (W) axis,
        # then every tap is a static in-bounds window.
        if px0 or px1:
            parts = []
            if px0:
                parts.append(jnp.zeros((in_h, px0, tb), jnp.float32))
            parts.append(xv)
            if px1:
                parts.append(jnp.zeros((in_h, px1, tb), jnp.float32))
            xv = jnp.concatenate(parts, axis=1)             # (in_h, Wp, tb)
        acc = None
        for j, t in enumerate(tx):
            if t == 0.0:
                continue
            term = t * xv[:, j:j + out_w, :]
            acc = term if acc is None else acc + term
        if acc is None:
            acc = jnp.zeros((in_h, out_w, tb), jnp.float32)
        # H halo: zero only full-width row strips; interior is one dense store.
        if py0 > 0:
            hbuf_ref[0:py0, :, :] = jnp.zeros((py0, out_w, tb), jnp.float32)
        hbuf_ref[py0:py0 + in_h, :, :] = acc
        tail = n_rows - (py0 + in_h)
        if tail > 0:
            hbuf_ref[py0 + in_h:n_rows, :, :] = jnp.zeros(
                (tail, out_w, tb), jnp.float32)

    hi = pl.program_id(1)
    if reuse_rows:
        # Row-tile axis is sequential ("arbitrary"): compute the row pass once
        # per channel tile and reuse it for every output-row tile.
        @pl.when(hi == 0)
        def _():
            row_pass()
    else:
        # Row-tile axis is "parallel" (may be sharded across TensorCores):
        # recompute the cheap row pass per tile so every step is independent.
        row_pass()

    # Vertical (column) pass for this tile of output rows: pure leading-dim
    # reads of the scratch -> no lane / sublane data movement.
    r0 = hi * tile_oh
    acc = None
    for i, t in enumerate(ty):
        if t == 0.0:
            continue
        term = t * hbuf_ref[pl.ds(r0 + i, tile_oh), :, :]
        acc = term if acc is None else acc + term
    if acc is None:
        acc = jnp.zeros((tile_oh, out_w, tb), jnp.float32)
    o_ref[...] = acc.astype(o_ref.dtype)


def blur(x, blur_taps, pad, upsample_factor=1):
    """Pallas TPU equivalent of Blur.forward (upfirdn2d with up = down = 1)."""
    tx, ty = _separable_taps(blur_taps, upsample_factor)
    kh, kw = len(ty), len(tx)

    n, c, h, w = x.shape
    py0 = px0 = int(pad[0])
    py1 = px1 = int(pad[1])

    # Negative pads crop the input (up = down = 1), as in upfirdn2d_native.
    ct, cb = max(-py0, 0), max(-py1, 0)
    cl, cr = max(-px0, 0), max(-px1, 0)
    if ct or cb or cl or cr:
        x = x[:, :, ct:h - cb, cl:w - cr]
        h, w = x.shape[2], x.shape[3]
    py0, py1, px0, px1 = max(py0, 0), max(py1, 0), max(px0, 0), max(px1, 0)

    out_h = h + py0 + py1 - kh + 1
    out_w = w + px0 + px1 - kw + 1
    assert out_h > 0 and out_w > 0, "blur output would be empty"

    bc = n * c
    # Channels-in-lanes layout: (H, W, N*C).
    x3 = jnp.transpose(x.reshape(bc, h, w), (1, 2, 0))
    itemsize = x3.dtype.itemsize

    # VMEM budget from the chip's capacity (v5e/v6e: 128 MiB, v7x: 64 MiB).
    try:
        vmem_cap = int(getattr(pltpu.get_tpu_info(), "vmem_capacity_bytes",
                               64 << 20))
    except Exception:
        vmem_cap = 64 << 20
    budget = max(8 << 20, min(int(vmem_cap * 0.55), 80 << 20))

    def footprint(tbc, toh):
        hrows = _cdiv(out_h, toh) * toh + kh - 1
        in_b = h * w * tbc * itemsize          # double-buffered input block
        out_b = toh * out_w * tbc * itemsize   # double-buffered output block
        hb = hrows * out_w * tbc * 4           # f32 row-pass scratch
        return 2 * in_b + 2 * out_b + hb

    # Channel (lane) tiling: full bc if it fits one tile, else multiples of
    # 128 sized to the VMEM budget with >= 2 tiles (megacore on the bc axis).
    if bc <= 128:
        tile_bc = bc
    else:
        mult = max(1, _cdiv(bc, 128) // 2)
        while mult > 1 and footprint(128 * mult, min(out_h, 128)) > budget:
            mult -= 1
        tile_bc = 128 * mult
    n_bc = _cdiv(bc, tile_bc)

    # Output-row tiling.
    tile_oh = min(out_h, 128)
    while tile_oh > 8 and footprint(tile_bc, tile_oh) > budget:
        tile_oh = max(8, tile_oh // 2)
    if n_bc == 1 and out_h >= 2 and tile_oh >= out_h:
        tile_oh = _cdiv(out_h, 2)   # guarantee >= 2 grid steps
    n_h = _cdiv(out_h, tile_oh)
    hbuf_rows = n_h * tile_oh + kh - 1
    # TODO(synk): for very large H*W the full-height input block can still
    # exceed VMEM; add H-halo input tiling via manual make_async_copy.

    reuse_rows = (n_bc >= 2) or (n_h == 1)
    dims = ("parallel", "arbitrary") if reuse_rows else ("parallel", "parallel")

    vmem_limit = int(max(min(vmem_cap - (8 << 20), 100 << 20), 32 << 20))

    kernel = functools.partial(
        _blur_kernel, tx=tx, ty=ty, px0=px0, px1=px1, py0=py0,
        in_h=h, in_w=w, out_w=out_w, tile_oh=tile_oh, reuse_rows=reuse_rows)

    out = pl.pallas_call(
        kernel,
        out_shape=jax.ShapeDtypeStruct((out_h, out_w, bc), x3.dtype),
        grid_spec=pltpu.PrefetchScalarGridSpec(
            num_scalar_prefetch=0,
            grid=(n_bc, n_h),
            in_specs=[pl.BlockSpec((h, w, tile_bc), lambda bi, hi: (0, 0, bi))],
            out_specs=pl.BlockSpec((tile_oh, out_w, tile_bc),
                                   lambda bi, hi: (hi, 0, bi)),
            scratch_shapes=[
                # TODO(synk): keep this scratch in bf16 for bf16 inputs on
                # v6e / v7x to halve its VMEM footprint.
                pltpu.VMEM((hbuf_rows, out_w, tile_bc), jnp.float32),
            ],
        ),
        compiler_params=pltpu.CompilerParams(
            dimension_semantics=dims,
            vmem_limit_bytes=vmem_limit,
        ),
    )(x3)

    return jnp.transpose(out, (2, 0, 1)).reshape(n, c, out_h, out_w)


if __name__ == "__main__":
    key = jax.random.PRNGKey(0)

    # Small shapes consistent with the module: batch=2, channels=4, 16x16.
    N, C, H, W = 2, 4, 16, 16
    x = jax.random.normal(key, (N, C, H, W), dtype=jnp.float32)

    blur_taps = [1, 3, 3, 1]   # standard StyleGAN blur kernel
    pad = (2, 1)               # -> same-size (16x16) output for a 4-tap kernel

    y = blur(x, blur_taps, pad, upsample_factor=1)
    y = jax.block_until_ready(y)

    # Independent reference: depthwise cross-correlation with the flipped
    # kernel on the zero-padded input (== upfirdn2d_native with up=down=1).
    k2d = jnp.asarray(make_kernel(blur_taps))
    xpad = jnp.pad(x, ((0, 0), (0, 0), (pad[0], pad[1]), (pad[0], pad[1])))
    w_ref = jnp.tile(jnp.flip(k2d, (0, 1))[None, None], (C, 1, 1, 1))
    y_ref = jax.lax.conv_general_dilated(
        xpad, w_ref, window_strides=(1, 1), padding="VALID",
        dimension_numbers=("NCHW", "OIHW", "NCHW"), feature_group_count=C,
        precision=jax.lax.Precision.HIGHEST)

    assert y.shape == (N, C, 16, 16), y.shape
    assert y_ref.shape == y.shape
    assert jnp.allclose(y, y_ref, atol=1e-5, rtol=1e-5)

    print("KERNEL_OK")
</pallas_src>

<mosaic_0001>
module attributes {stable_mosaic.version = 11 : i64} {
  func.func @_blur_kernel(%arg0: i32, %arg1: i32, %arg2: memref<16x16x8xf32, #tpu.memory_space<vmem>>, %arg3: memref<8x16x8xf32, #tpu.memory_space<vmem>>, %arg4: memref<19x16x8xf32, #tpu.memory_space<vmem>>) attributes {dimension_semantics = [#tpu.dimension_semantics<parallel>, #tpu.dimension_semantics<parallel>], iteration_bounds = array<i64: 1, 2>, scalar_prefetch = 0 : i64, scratch_operands = 1 : i64, tpu.core_type = #tpu.core_type<tc>, window_params = [{transform_indices = @transform_0, window_bounds = array<i64: 16, 16, 8>}, {transform_indices = @transform_1, window_bounds = array<i64: 8, 16, 8>}]} {
    %c0 = arith.constant 0 : index
    %c0_0 = arith.constant 0 : index
    %c0_1 = arith.constant 0 : index
    %0 = vector.load %arg2[%c0, %c0_0, %c0_1] : memref<16x16x8xf32, #tpu.memory_space<vmem>>, vector<16x16x8xf32>
    %cst = arith.constant 0.000000e+00 : f32
    %1 = vector.broadcast %cst : f32 to vector<16x2x8xf32>
    %cst_2 = arith.constant 0.000000e+00 : f32
    %2 = vector.broadcast %cst_2 : f32 to vector<16x1x8xf32>
    %3 = tpu.concatenate %1, %0, %2 in 1 : vector<16x2x8xf32>, vector<16x16x8xf32>, vector<16x1x8xf32> -> vector<16x19x8xf32>
    %4 = vector.extract_strided_slice %3 {offsets = [0, 0, 0], sizes = [16, 16, 8], strides = [1, 1, 1]} : vector<16x19x8xf32> to vector<16x16x8xf32>
    %cst_3 = arith.constant 1.250000e-01 : f32
    %5 = vector.broadcast %cst_3 : f32 to vector<16x16x8xf32>
    %6 = arith.mulf %5, %4 : vector<16x16x8xf32>
    %7 = vector.extract_strided_slice %3 {offsets = [0, 1, 0], sizes = [16, 16, 8], strides = [1, 1, 1]} : vector<16x19x8xf32> to vector<16x16x8xf32>
    %cst_4 = arith.constant 3.750000e-01 : f32
    %8 = vector.broadcast %cst_4 : f32 to vector<16x16x8xf32>
    %9 = arith.mulf %8, %7 : vector<16x16x8xf32>
    %10 = arith.addf %6, %9 : vector<16x16x8xf32>
    %11 = vector.extract_strided_slice %3 {offsets = [0, 2, 0], sizes = [16, 16, 8], strides = [1, 1, 1]} : vector<16x19x8xf32> to vector<16x16x8xf32>
    %cst_5 = arith.constant 3.750000e-01 : f32
    %12 = vector.broadcast %cst_5 : f32 to vector<16x16x8xf32>
    %13 = arith.mulf %12, %11 : vector<16x16x8xf32>
    %14 = arith.addf %10, %13 : vector<16x16x8xf32>
    %15 = vector.extract_strided_slice %3 {offsets = [0, 3, 0], sizes = [16, 16, 8], strides = [1, 1, 1]} : vector<16x19x8xf32> to vector<16x16x8xf32>
    %cst_6 = arith.constant 1.250000e-01 : f32
    %16 = vector.broadcast %cst_6 : f32 to vector<16x16x8xf32>
    %17 = arith.mulf %16, %15 : vector<16x16x8xf32>
    %18 = arith.addf %14, %17 : vector<16x16x8xf32>
    %cst_7 = arith.constant 0.000000e+00 : f32
    %19 = vector.broadcast %cst_7 : f32 to vector<2x16x8xf32>
    %c0_8 = arith.constant 0 : index
    %c0_9 = arith.constant 0 : index
    %c0_10 = arith.constant 0 : index
    %20 = vector.load %arg4[%c0_8, %c0_9, %c0_10] : memref<19x16x8xf32, #tpu.memory_space<vmem>>, vector<2x16x8xf32>
    tpu.vector_store %arg4[%c0_8, %c0_9, %c0_10], %19 {strides = array<i32>} : memref<19x16x8xf32, #tpu.memory_space<vmem>>, vector<2x16x8xf32>,
    %c2 = arith.constant 2 : index
    %c0_11 = arith.constant 0 : index
    %c0_12 = arith.constant 0 : index
    %21 = vector.load %arg4[%c2, %c0_11, %c0_12] : memref<19x16x8xf32, #tpu.memory_space<vmem>>, vector<16x16x8xf32>
    tpu.vector_store %arg4[%c2, %c0_11, %c0_12], %18 {strides = array<i32>} : memref<19x16x8xf32, #tpu.memory_space<vmem>>, vector<16x16x8xf32>,
    %cst_13 = arith.constant 0.000000e+00 : f32
    %22 = vector.broadcast %cst_13 : f32 to vector<1x16x8xf32>
    %c18 = arith.constant 18 : index
    %c0_14 = arith.constant 0 : index
    %c0_15 = arith.constant 0 : index
    %23 = vector.load %arg4[%c18, %c0_14, %c0_15] : memref<19x16x8xf32, #tpu.memory_space<vmem>>, vector<1x16x8xf32>
    tpu.vector_store %arg4[%c18, %c0_14, %c0_15], %22 {strides = array<i32>} : memref<19x16x8xf32, #tpu.memory_space<vmem>>, vector<1x16x8xf32>,
    %c8_i32 = arith.constant 8 : i32
    %24 = arith.muli %arg1, %c8_i32 : i32
    %c0_i32 = arith.constant 0 : i32
    %25 = arith.addi %24, %c0_i32 : i32
    %26 = arith.index_cast %25 : i32 to index
    %c0_16 = arith.constant 0 : index
    %c0_17 = arith.constant 0 : index
    %27 = vector.load %arg4[%26, %c0_16, %c0_17] : memref<19x16x8xf32, #tpu.memory_space<vmem>>, vector<8x16x8xf32>
    %cst_18 = arith.constant 1.250000e-01 : f32
    %28 = vector.broadcast %cst_18 : f32 to vector<8x16x8xf32>
    %29 = arith.mulf %28, %27 : vector<8x16x8xf32>
    %c1_i32 = arith.constant 1 : i32
    %30 = arith.addi %24, %c1_i32 : i32
    %31 = arith.index_cast %30 : i32 to index
    %c0_19 = arith.constant 0 : index
    %c0_20 = arith.constant 0 : index
    %32 = vector.load %arg4[%31, %c0_19, %c0_20] : memref<19x16x8xf32, #tpu.memory_space<vmem>>, vector<8x16x8xf32>
    %cst_21 = arith.constant 3.750000e-01 : f32
    %33 = vector.broadcast %cst_21 : f32 to vector<8x16x8xf32>
    %34 = arith.mulf %33, %32 : vector<8x16x8xf32>
    %35 = arith.addf %29, %34 : vector<8x16x8xf32>
    %c2_i32 = arith.constant 2 : i32
    %36 = arith.addi %24, %c2_i32 : i32
    %37 = arith.index_cast %36 : i32 to index
    %c0_22 = arith.constant 0 : index
    %c0_23 = arith.constant 0 : index
    %38 = vector.load %arg4[%37, %c0_22, %c0_23] : memref<19x16x8xf32, #tpu.memory_space<vmem>>, vector<8x16x8xf32>
    %cst_24 = arith.constant 3.750000e-01 : f32
    %39 = vector.broadcast %cst_24 : f32 to vector<8x16x8xf32>
    %40 = arith.mulf %39, %38 : vector<8x16x8xf32>
    %41 = arith.addf %35, %40 : vector<8x16x8xf32>
    %c3_i32 = arith.constant 3 : i32
    %42 = arith.addi %24, %c3_i32 : i32
    %43 = arith.index_cast %42 : i32 to index
    %c0_25 = arith.constant 0 : index
    %c0_26 = arith.constant 0 : index
    %44 = vector.load %arg4[%43, %c0_25, %c0_26] : memref<19x16x8xf32, #tpu.memory_space<vmem>>, vector<8x16x8xf32>
    %cst_27 = arith.constant 1.250000e-01 : f32
    %45 = vector.broadcast %cst_27 : f32 to vector<8x16x8xf32>
    %46 = arith.mulf %45, %44 : vector<8x16x8xf32>
    %47 = arith.addf %41, %46 : vector<8x16x8xf32>
    %c0_28 = arith.constant 0 : index
    %c0_29 = arith.constant 0 : index
    %c0_30 = arith.constant 0 : index
    %48 = vector.load %arg3[%c0_28, %c0_29, %c0_30] : memref<8x16x8xf32, #tpu.memory_space<vmem>>, vector<8x16x8xf32>
    tpu.vector_store %arg3[%c0_28, %c0_29, %c0_30], %47 {strides = array<i32>} : memref<8x16x8xf32, #tpu.memory_space<vmem>>, vector<8x16x8xf32>,
    return
  }
  func.func @transform_0(%arg0: i32, %arg1: i32) -> (i32, i32, i32) {
    %c0_i32 = arith.constant 0 : i32
    %c0_i32_0 = arith.constant 0 : i32
    %c0_i32_1 = arith.constant 0 : i32
    return %c0_i32, %c0_i32_0, %arg0 : i32, i32, i32
  }
  func.func @transform_1(%arg0: i32, %arg1: i32) -> (i32, i32, i32) {
    %c0_i32 = arith.constant 0 : i32
    %c0_i32_0 = arith.constant 0 : i32
    return %arg1, %c0_i32, %arg0 : i32, i32, i32
  }
}

</mosaic_0001>

<bundles_post_ra>
// kernel: tpu_custom_call.1
= control target key start
LH: loop header
LB: loop body
LE: loop exit
PB: predicated region body
PF: predicated region fallthrough
CT: control target
= control target key end

     0   :  { %s1431_s6 = smov 0   ;;  %s1433_s7 = smov 0   ;;  %s1804_s0 = inlined_call_operand.vmem [shape: f32[16,16,8], index: 0, kind: input, shape index: {}]   ;;  %s1805_s1 = inlined_call_operand.vmem [shape: f32[16,16,8], index: 1, kind: output, shape index: {}]  }
   0x1   :  { %s1435_s8 = smov 0  }
   0x2 LB: > { %s20_s9 = sadd.s32 1, %s1414_s7  ;;  %p1304_p0 = scmp.ge.s32.totalorder %s1418_s8, 1  ;;  %s1418_s8 = sphi %s1435_s8, %s11_s8   ;;  %s1414_s7 = sphi %s1433_s7, %s1807_s7   ;;  %s1410_s6 = sphi %s1431_s6, %s1806_s6  }
   0x3   : > { %p21_p1 = scmp.ge.s32.totalorder %s20_s9, 2  ;;  %p100_p2 = scmp.lt.s32.totalorder %s1418_s8, 3 }
   0x5   : > { %s1809_s9 = smov (%p21_p1, %s20_s9), 0  ;;  %p101_p3 = pnand %p1304_p0, %p100_p2 }
   0x6   : > { %vm957_vm0 = vcmask (!%p101_p3), 64512   ;;  %v137_v0 = vld [vmem:[%s1804_s0] sm:$0xff] (!%p101_p3)  ;;  %v138_v1 = vld [vmem:[%s1804_s0 + $0x8] sm:$0xff] (!%p101_p3)  ;;  %vm201_vm1 = vcmask (!%p101_p3), 1041408   ;;  %v1420_v2 = vmov (!%p101_p3), 0.0   ;;  %vm458_vm2 = vcmask (!%p101_p3), 1046528  }
   0x7   : > { %104 = sbr.rel (%p101_p3) target bundleno = 177 (0xb1), region = 24  ;;  %958 = vst.msk [vmem:[#allocation2] sm:$0xff] (!%p101_p3), %vm957_vm0, %v1420_v2  ;;  %959 = vst.msk [vmem:[#allocation2 + $0x8] sm:$0xff] (!%p101_p3), %vm957_vm0, %v1420_v2  ;;  %v202_v3 = vrot.slane (!%p101_p3), %v137_v0, 6  ;;  %v203_v4 = vrot.slane (!%p101_p3), %v138_v1, 6  ;;  %v139_v5 = vld [vmem:[%s1804_s0 + $0x10] sm:$0xff] (!%p101_p3) }
   0x8   : > { %960 = vst.msk [vmem:[#allocation2 + $0x10] sm:$0xff] (!%p101_p3), %vm957_vm0, %v1420_v2  ;;  %961 = vst.msk [vmem:[#allocation2 + $0x18] sm:$0xff] (!%p101_p3), %vm957_vm0, %v1420_v2  ;;  %v140_v6 = vld [vmem:[%s1804_s0 + $0x18] sm:$0xff] (!%p101_p3)  ;;  %vm603_vm3 = vcmask (!%p101_p3), 1045504   ;;  %vm812_vm4 = vcmask (!%p101_p3), 1044480   ;;  %v205_v7 = vrot.slane (!%p101_p3), %v139_v5, 6 }
   0x9   : > { %996 = vst.msk [vmem:[#allocation2 + $0x120] sm:$0xff] (!%p101_p3), %vm957_vm0, %v1420_v2  ;;  %997 = vst.msk [vmem:[#allocation2 + $0x128] sm:$0xff] (!%p101_p3), %vm957_vm0, %v1420_v2  ;;  %v206_v8 = vrot.slane (!%p101_p3), %v140_v6, 6  ;;  %v141_v9 = vld [vmem:[%s1804_s0 + $0x20] sm:$0xff] (!%p101_p3)  ;;  %v204_v10 = vsel (!%p101_p3), %vm201_vm1, %v202_v3, %v203_v4  ;;  %v298_v11 = vsel (!%p101_p3), %vm201_vm1, 0.0, %v202_v3  ;;  %v314_v12 = vsel (!%p101_p3), %vm201_vm1, %v203_v4, 0.0 }
   0xa   : > { %v208_v13 = vrot.slane (!%p101_p3), %v141_v9, 6  ;;  %v330_v14 = vmul.f32 (!%p101_p3), 0.125, %v298_v11  ;;  %v331_v15 = vmul.f32 (!%p101_p3), 0.125, %v204_v10  ;;  %v362_v16 = vmul.f32 (!%p101_p3), 0.375, %v298_v11  ;;  %v142_v46 = vld [vmem:[%s1804_s0 + $0x28] sm:$0xff] (!%p101_p3)  ;;  %s1305_s24 = sshll.u32 (!%p101_p3), %s1410_s6, 3 }
   0xb   : > { %v363_v17 = vmul.f32 (!%p101_p3), 0.375, %v204_v10  ;;  %v364_v18 = vmul.f32 (!%p101_p3), 0.375, %v314_v12  ;;  %v748_v19 = vmul.f32 (!%p101_p3), 0.125, %v314_v12  ;;  %v207_v20 = vsel (!%p101_p3), %vm201_vm1, %v205_v7, %v206_v8  ;;  %s1367_s25 = sshll.u32 (!%p101_p3), %s1410_s6, 7  ;;  %p128_p4 = scmp.lt.s32.totalorder (!%p101_p3), %s1305_s24, 15 }
   0xc   : > { %v299_v21 = vsel (!%p101_p3), %vm201_vm1, 0.0, %v205_v7  ;;  %v459_v22 = vrot.slane (!%p101_p3), %v362_v16, 1  ;;  %v604_v24 = vrot.slane (!%p101_p3), %v362_v16, 2  ;;  %v813_v26 = vrot.slane (!%p101_p3), %v330_v14, 3  ;;  %v144_v16 = vld [vmem:[%s1804_s0 + $0x38] sm:$0xff] (!%p101_p3)  ;;  %s1733_s26 = scalar_lea.vmem (!%p101_p3), [#allocation2], %s1367_s25 }
   0xd   : > { %v460_v23 = vrot.slane (!%p101_p3), %v363_v17, 1  ;;  %v605_v25 = vrot.slane (!%p101_p3), %v363_v17, 2  ;;  %v814_v27 = vrot.slane (!%p101_p3), %v331_v15, 3  ;;  %v462_v28 = vrot.slane (!%p101_p3), %v364_v18, 1 }
   0xe   : > { %v607_v29 = vrot.slane %v364_v18, 2  ;;  %v816_v32 = vrot.slane %v748_v19, 3  ;;  %v332_v33 = vmul.f32 0.125, %v299_v21  ;;  %v333_v40 = vmul.f32 0.125, %v207_v20  ;;  %s1811_s24 = smov (!%p128_p4, %s1305_s24), 15 }
   0xf   : > { %v461_v30 = vsel %vm458_vm2, %v459_v22, %v460_v23  ;;  %v606_v31 = vsel %vm603_vm3, %v604_v24, %v605_v25  ;;  %v815_v35 = vsel %vm812_vm4, %v813_v26, %v814_v27  ;;  %v463_v36 = vsel %vm458_vm2, %v460_v23, %v462_v28  ;;  %s1366_s6 = sshll.u32 %s1811_s24, 4 }
  0x10   : > { %v571_v34 = vadd.f32 %v461_v30, %v330_v14  ;;  %v608_v37 = vsel %vm603_vm3, %v605_v25, %v607_v29  ;;  %v572_v38 = vadd.f32 %v463_v36, %v331_v15  ;;  %v817_v39 = vsel %vm812_vm4, %v814_v27, %v816_v32  ;;  %s1749_s29 = scalar_lea.vmem %s1805_s1, %s1366_s6 }
  0x11   : > { %v365_v41 = vmul.f32 0.375, %v299_v21  ;;  %v366_v43 = vmul.f32 0.375, %v207_v20  ;;  %v818_v44 = vrot.slane %v332_v33, 3  ;;  %v315_v45 = vsel %vm201_vm1, %v206_v8, 0.0 }
  0x12   : > { %v716_v42 = vadd.f32 %v606_v31, %v571_v34  ;;  %v717_v47 = vadd.f32 %v608_v37, %v572_v38  ;;  %v819_v50 = vrot.slane %v333_v40, 3  ;;  %v367_v54 = vmul.f32 0.375, %v315_v45 }
  0x13   : > { %v464_v48 = vrot.slane %v365_v41, 1  ;;  %v609_v49 = vrot.slane %v365_v41, 2  ;;  %v465_v52 = vrot.slane %v366_v43, 1  ;;  %v610_v53 = vrot.slane %v366_v43, 2 }
  0x14   : > { %v925_v51 = vadd.f32 %v815_v35, %v716_v42  ;;  %v926_v55 = vadd.f32 %v817_v39, %v717_v47  ;;  %v820_v56 = vsel %vm812_vm4, %v818_v44, %v819_v50  ;;  %v749_v57 = vmul.f32 0.125, %v315_v45 }
  0x15   : > { %v209_v58 = vrot.slane %v142_v46, 6  ;;  %v466_v59 = vsel %vm458_vm2, %v464_v48, %v465_v52  ;;  %v611_v60 = vsel %vm603_vm3, %v609_v49, %v610_v53  ;;  %v467_v61 = vrot.slane %v367_v54, 1  ;;  %v145_v49 = vld [vmem:[%s1804_s0 + $0x40] sm:$0xff] }
  0x16   : > { %963 = vst.msk [vmem:[#allocation2 + $0x20] sm:$0xff] %vm957_vm0, %v925_v51  ;;  %v612_v62 = vrot.slane %v367_v54, 2  ;;  %964 = vst.msk [vmem:[#allocation2 + $0x28] sm:$0xff] %vm957_vm0, %v926_v55  ;;  %v573_v63 = vadd.f32 %v466_v59, %v332_v33  ;;  %v821_v0 = vrot.slane %v749_v57, 3  ;;  %v300_v2 = vsel %vm201_vm1, 0.0, %v208_v13 }
  0x17   : > { %v210_v1 = vsel %vm201_vm1, %v208_v13, %v209_v58  ;;  %v468_v3 = vsel %vm458_vm2, %v465_v52, %v467_v61  ;;  %v334_v5 = vmul.f32 0.125, %v300_v2  ;;  %v368_v10 = vmul.f32 0.375, %v300_v2  ;;  %v143_v13 = vld [vmem:[%s1804_s0 + $0x30] sm:$0xff] }
  0x18   : > { %v613_v4 = vsel %vm603_vm3, %v610_v53, %v612_v62  ;;  %v335_v6 = vmul.f32 0.125, %v210_v1  ;;  %v718_v7 = vadd.f32 %v611_v60, %v573_v63  ;;  %v574_v8 = vadd.f32 %v468_v3, %v333_v40 }
  0x19   : > { %v822_v9 = vsel %vm812_vm4, %v819_v50, %v821_v0  ;;  %v369_v11 = vmul.f32 0.375, %v210_v1  ;;  %v823_v12 = vrot.slane %v334_v5, 3  ;;  %v316_v15 = vsel %vm201_vm1, %v209_v58, 0.0  ;;  %v146_v50 = vld [vmem:[%s1804_s0 + $0x48] sm:$0xff] }
  0x1a   : > { %v824_v14 = vrot.slane %v335_v6, 3  ;;  %v927_v17 = vadd.f32 %v820_v56, %v718_v7  ;;  %v719_v18 = vadd.f32 %v613_v4, %v574_v8  ;;  %v469_v19 = vrot.slane %v368_v10, 1 }
  0x1b   : > { %v614_v20 = vrot.slane %v368_v10, 2  ;;  %v470_v21 = vrot.slane %v369_v11, 1  ;;  %v615_v22 = vrot.slane %v369_v11, 2  ;;  %v370_v24 = vmul.f32 0.375, %v316_v15 }
  0x1c   : > { %v825_v23 = vsel %vm812_vm4, %v823_v12, %v824_v14  ;;  %965 = vst.msk [vmem:[#allocation2 + $0x30] sm:$0xff] %vm957_vm0, %v927_v17  ;;  %v928_v25 = vadd.f32 %v822_v9, %v719_v18  ;;  %v750_v26 = vmul.f32 0.125, %v316_v15  ;;  %v211_v27 = vrot.slane %v143_v13, 6 }
  0x1d   : > { %v212_v28 = vrot.slane %v144_v16, 6  ;;  %v471_v29 = vsel %vm458_vm2, %v469_v19, %v470_v21  ;;  %v616_v30 = vsel %vm603_vm3, %v614_v20, %v615_v22  ;;  %v472_v31 = vrot.slane %v370_v24, 1  ;;  %v147_v19 = vld [vmem:[%s1804_s0 + $0x50] sm:$0xff]  ;;  %v148_v20 = vld [vmem:[%s1804_s0 + $0x58] sm:$0xff] }
  0x1e   : > { %v617_v32 = vrot.slane %v370_v24, 2  ;;  %966 = vst.msk [vmem:[#allocation2 + $0x38] sm:$0xff] %vm957_vm0, %v928_v25  ;;  %v575_v33 = vadd.f32 %v471_v29, %v334_v5  ;;  %v826_v34 = vrot.slane %v750_v26, 3  ;;  %v301_v36 = vsel %vm201_vm1, 0.0, %v211_v27 }
  0x1f   : > { %v213_v35 = vsel %vm201_vm1, %v211_v27, %v212_v28  ;;  %v473_v37 = vsel %vm458_vm2, %v470_v21, %v472_v31  ;;  %v336_v39 = vmul.f32 0.125, %v301_v36  ;;  %v371_v44 = vmul.f32 0.375, %v301_v36 }
  0x20   : > { %v618_v38 = vsel %vm603_vm3, %v615_v22, %v617_v32  ;;  %v337_v40 = vmul.f32 0.125, %v213_v35  ;;  %v720_v41 = vadd.f32 %v616_v30, %v575_v33  ;;  %v576_v42 = vadd.f32 %v473_v37, %v335_v6 }
  0x21   : > { %v827_v43 = vsel %vm812_vm4, %v824_v14, %v826_v34  ;;  %v372_v45 = vmul.f32 0.375, %v213_v35  ;;  %v828_v46 = vrot.slane %v336_v39, 3  ;;  %v317_v48 = vsel %vm201_vm1, %v212_v28, 0.0 }
  0x22   : > { %v829_v47 = vrot.slane %v337_v40, 3  ;;  %v929_v51 = vadd.f32 %v825_v23, %v720_v41  ;;  %v721_v52 = vadd.f32 %v618_v38, %v576_v42  ;;  %v474_v53 = vrot.slane %v371_v44, 1 }
  0x23   : > { %v619_v54 = vrot.slane %v371_v44, 2  ;;  %v475_v55 = vrot.slane %v372_v45, 1  ;;  %v620_v56 = vrot.slane %v372_v45, 2  ;;  %v373_v58 = vmul.f32 0.375, %v317_v48 }
  0x24   : > { %v830_v57 = vsel %vm812_vm4, %v828_v46, %v829_v47  ;;  %967 = vst.msk [vmem:[#allocation2 + $0x40] sm:$0xff] %vm957_vm0, %v929_v51  ;;  %v930_v59 = vadd.f32 %v827_v43, %v721_v52  ;;  %v751_v60 = vmul.f32 0.125, %v317_v48  ;;  %v214_v61 = vrot.slane %v145_v49, 6 }
  0x25   : > { %v215_v62 = vrot.slane %v146_v50, 6  ;;  %v476_v63 = vsel %vm458_vm2, %v474_v53, %v475_v55  ;;  %v621_v0 = vsel %vm603_vm3, %v619_v54, %v620_v56  ;;  %v477_v1 = vrot.slane %v373_v58, 1  ;;  %v149_v53 = vld [vmem:[%s1804_s0 + $0x60] sm:$0xff]  ;;  %v150_v54 = vld [vmem:[%s1804_s0 + $0x68] sm:$0xff] }
  0x26   : > { %v622_v2 = vrot.slane %v373_v58, 2  ;;  %968 = vst.msk [vmem:[#allocation2 + $0x48] sm:$0xff] %vm957_vm0, %v930_v59  ;;  %v577_v3 = vadd.f32 %v476_v63, %v336_v39  ;;  %v831_v4 = vrot.slane %v751_v60, 3  ;;  %v302_v6 = vsel %vm201_vm1, 0.0, %v214_v61 }
  0x27   : > { %v216_v5 = vsel %vm201_vm1, %v214_v61, %v215_v62  ;;  %v478_v7 = vsel %vm458_vm2, %v475_v55, %v477_v1  ;;  %v338_v9 = vmul.f32 0.125, %v302_v6  ;;  %v374_v15 = vmul.f32 0.375, %v302_v6 }
  0x28   : > { %v623_v8 = vsel %vm603_vm3, %v620_v56, %v622_v2  ;;  %v339_v10 = vmul.f32 0.125, %v216_v5  ;;  %v722_v11 = vadd.f32 %v621_v0, %v577_v3  ;;  %v578_v12 = vadd.f32 %v478_v7, %v337_v40 }
  0x29   : > { %v832_v14 = vsel %vm812_vm4, %v829_v47, %v831_v4  ;;  %v375_v13 = vmul.f32 0.375, %v216_v5  ;;  %v833_v16 = vrot.slane %v338_v9, 3  ;;  %v318_v18 = vsel %vm201_vm1, %v215_v62, 0.0 }
  0x2a   : > { %v834_v17 = vrot.slane %v339_v10, 3  ;;  %v931_v21 = vadd.f32 %v830_v57, %v722_v11  ;;  %v723_v22 = vadd.f32 %v623_v8, %v578_v12  ;;  %v479_v23 = vrot.slane %v374_v15, 1 }
  0x2b   : > { %v624_v24 = vrot.slane %v374_v15, 2  ;;  %v480_v25 = vrot.slane %v375_v13, 1  ;;  %v625_v26 = vrot.slane %v375_v13, 2  ;;  %v376_v28 = vmul.f32 0.375, %v318_v18 }
  0x2c   : > { %v835_v27 = vsel %vm812_vm4, %v833_v16, %v834_v17  ;;  %969 = vst.msk [vmem:[#allocation2 + $0x50] sm:$0xff] %vm957_vm0, %v931_v21  ;;  %v932_v29 = vadd.f32 %v832_v14, %v723_v22  ;;  %v752_v30 = vmul.f32 0.125, %v318_v18  ;;  %v217_v31 = vrot.slane %v147_v19, 6 }
  0x2d   : > { %v218_v32 = vrot.slane %v148_v20, 6  ;;  %v481_v33 = vsel %vm458_vm2, %v479_v23, %v480_v25  ;;  %v626_v34 = vsel %vm603_vm3, %v624_v24, %v625_v26  ;;  %v482_v35 = vrot.slane %v376_v28, 1  ;;  %v151_v23 = vld [vmem:[%s1804_s0 + $0x70] sm:$0xff]  ;;  %v152_v24 = vld [vmem:[%s1804_s0 + $0x78] sm:$0xff] }
  0x2e   : > { %v627_v36 = vrot.slane %v376_v28, 2  ;;  %970 = vst.msk [vmem:[#allocation2 + $0x58] sm:$0xff] %vm957_vm0, %v932_v29  ;;  %v579_v37 = vadd.f32 %v481_v33, %v338_v9  ;;  %v836_v38 = vrot.slane %v752_v30, 3  ;;  %v303_v40 = vsel %vm201_vm1, 0.0, %v217_v31 }
  0x2f   : > { %v219_v39 = vsel %vm201_vm1, %v217_v31, %v218_v32  ;;  %v483_v41 = vsel %vm458_vm2, %v480_v25, %v482_v35  ;;  %v340_v43 = vmul.f32 0.125, %v303_v40  ;;  %v377_v48 = vmul.f32 0.375, %v303_v40 }
  0x30   : > { %v628_v42 = vsel %vm603_vm3, %v625_v26, %v627_v36  ;;  %v341_v44 = vmul.f32 0.125, %v219_v39  ;;  %v724_v45 = vadd.f32 %v626_v34, %v579_v37  ;;  %v580_v46 = vadd.f32 %v483_v41, %v339_v10 }
  0x31   : > { %v837_v47 = vsel %vm812_vm4, %v834_v17, %v836_v38  ;;  %v378_v49 = vmul.f32 0.375, %v219_v39  ;;  %v838_v50 = vrot.slane %v340_v43, 3  ;;  %v319_v52 = vsel %vm201_vm1, %v218_v32, 0.0 }
  0x32   : > { %v839_v51 = vrot.slane %v341_v44, 3  ;;  %v933_v55 = vadd.f32 %v835_v27, %v724_v45  ;;  %v725_v56 = vadd.f32 %v628_v42, %v580_v46  ;;  %v484_v57 = vrot.slane %v377_v48, 1 }
  0x33   : > { %v629_v58 = vrot.slane %v377_v48, 2  ;;  %v485_v59 = vrot.slane %v378_v49, 1  ;;  %v630_v60 = vrot.slane %v378_v49, 2  ;;  %v379_v62 = vmul.f32 0.375, %v319_v52 }
  0x34   : > { %v840_v61 = vsel %vm812_vm4, %v838_v50, %v839_v51  ;;  %971 = vst.msk [vmem:[#allocation2 + $0x60] sm:$0xff] %vm957_vm0, %v933_v55  ;;  %v934_v63 = vadd.f32 %v837_v47, %v725_v56  ;;  %v753_v0 = vmul.f32 0.125, %v319_v52  ;;  %v220_v1 = vrot.slane %v149_v53, 6 }
  0x35   : > { %v221_v2 = vrot.slane %v150_v54, 6  ;;  %v486_v3 = vsel %vm458_vm2, %v484_v57, %v485_v59  ;;  %v631_v4 = vsel %vm603_vm3, %v629_v58, %v630_v60  ;;  %v487_v5 = vrot.slane %v379_v62, 1  ;;  %v153_v57 = vld [vmem:[%s1804_s0 + $0x80] sm:$0xff]  ;;  %v154_v58 = vld [vmem:[%s1804_s0 + $0x88] sm:$0xff] }
  0x36   : > { %v632_v6 = vrot.slane %v379_v62, 2  ;;  %972 = vst.msk [vmem:[#allocation2 + $0x68] sm:$0xff] %vm957_vm0, %v934_v63  ;;  %v581_v7 = vadd.f32 %v486_v3, %v340_v43  ;;  %v841_v8 = vrot.slane %v753_v0, 3  ;;  %v304_v10 = vsel %vm201_vm1, 0.0, %v220_v1 }
  0x37   : > { %v222_v9 = vsel %vm201_vm1, %v220_v1, %v221_v2  ;;  %v488_v11 = vsel %vm458_vm2, %v485_v59, %v487_v5  ;;  %v342_v14 = vmul.f32 0.125, %v304_v10  ;;  %v380_v18 = vmul.f32 0.375, %v304_v10 }
  0x38   : > { %v633_v12 = vsel %vm603_vm3, %v630_v60, %v632_v6  ;;  %v343_v15 = vmul.f32 0.125, %v222_v9  ;;  %v726_v13 = vadd.f32 %v631_v4, %v581_v7  ;;  %v582_v16 = vadd.f32 %v488_v11, %v341_v44 }
  0x39   : > { %v842_v17 = vsel %vm812_vm4, %v839_v51, %v841_v8  ;;  %v381_v19 = vmul.f32 0.375, %v222_v9  ;;  %v843_v20 = vrot.slane %v342_v14, 3  ;;  %v320_v22 = vsel %vm201_vm1, %v221_v2, 0.0 }
  0x3a   : > { %v844_v21 = vrot.slane %v343_v15, 3  ;;  %v935_v25 = vadd.f32 %v840_v61, %v726_v13  ;;  %v727_v26 = vadd.f32 %v633_v12, %v582_v16  ;;  %v489_v27 = vrot.slane %v380_v18, 1 }
  0x3b   : > { %v634_v28 = vrot.slane %v380_v18, 2  ;;  %v490_v29 = vrot.slane %v381_v19, 1  ;;  %v635_v30 = vrot.slane %v381_v19, 2  ;;  %v382_v32 = vmul.f32 0.375, %v320_v22 }
  0x3c   : > { %v845_v31 = vsel %vm812_vm4, %v843_v20, %v844_v21  ;;  %973 = vst.msk [vmem:[#allocation2 + $0x70] sm:$0xff] %vm957_vm0, %v935_v25  ;;  %v936_v33 = vadd.f32 %v842_v17, %v727_v26  ;;  %v754_v34 = vmul.f32 0.125, %v320_v22  ;;  %v223_v35 = vrot.slane %v151_v23, 6 }
  0x3d   : > { %v224_v36 = vrot.slane %v152_v24, 6  ;;  %v491_v37 = vsel %vm458_vm2, %v489_v27, %v490_v29  ;;  %v636_v38 = vsel %vm603_vm3, %v634_v28, %v635_v30  ;;  %v492_v39 = vrot.slane %v382_v32, 1  ;;  %v155_v27 = vld [vmem:[%s1804_s0 + $0x90] sm:$0xff]  ;;  %v156_v28 = vld [vmem:[%s1804_s0 + $0x98] sm:$0xff] }
  0x3e   : > { %v637_v40 = vrot.slane %v382_v32, 2  ;;  %974 = vst.msk [vmem:[#allocation2 + $0x78] sm:$0xff] %vm957_vm0, %v936_v33  ;;  %v583_v41 = vadd.f32 %v491_v37, %v342_v14  ;;  %v846_v42 = vrot.slane %v754_v34, 3  ;;  %v305_v44 = vsel %vm201_vm1, 0.0, %v223_v35 }
  0x3f   : > { %v225_v43 = vsel %vm201_vm1, %v223_v35, %v224_v36  ;;  %v493_v45 = vsel %vm458_vm2, %v490_v29, %v492_v39  ;;  %v344_v47 = vmul.f32 0.125, %v305_v44  ;;  %v383_v52 = vmul.f32 0.375, %v305_v44 }
  0x40   : > { %v638_v46 = vsel %vm603_vm3, %v635_v30, %v637_v40  ;;  %v345_v48 = vmul.f32 0.125, %v225_v43  ;;  %v728_v49 = vadd.f32 %v636_v38, %v583_v41  ;;  %v584_v50 = vadd.f32 %v493_v45, %v343_v15 }
  0x41   : > { %v847_v51 = vsel %vm812_vm4, %v844_v21, %v846_v42  ;;  %v384_v53 = vmul.f32 0.375, %v225_v43  ;;  %v848_v54 = vrot.slane %v344_v47, 3  ;;  %v321_v56 = vsel %vm201_vm1, %v224_v36, 0.0 }
  0x42   : > { %v849_v55 = vrot.slane %v345_v48, 3  ;;  %v937_v59 = vadd.f32 %v845_v31, %v728_v49  ;;  %v729_v60 = vadd.f32 %v638_v46, %v584_v50  ;;  %v494_v61 = vrot.slane %v383_v52, 1 }
  0x43   : > { %v639_v62 = vrot.slane %v383_v52, 2  ;;  %v495_v63 = vrot.slane %v384_v53, 1  ;;  %v640_v0 = vrot.slane %v384_v53, 2  ;;  %v385_v2 = vmul.f32 0.375, %v321_v56 }
  0x44   : > { %v850_v1 = vsel %vm812_vm4, %v848_v54, %v849_v55  ;;  %975 = vst.msk [vmem:[#allocation2 + $0x80] sm:$0xff] %vm957_vm0, %v937_v59  ;;  %v938_v3 = vadd.f32 %v847_v51, %v729_v60  ;;  %v755_v4 = vmul.f32 0.125, %v321_v56  ;;  %v226_v5 = vrot.slane %v153_v57, 6 }
  0x45   : > { %v227_v6 = vrot.slane %v154_v58, 6  ;;  %v496_v7 = vsel %vm458_vm2, %v494_v61, %v495_v63  ;;  %v641_v8 = vsel %vm603_vm3, %v639_v62, %v640_v0  ;;  %v497_v9 = vrot.slane %v385_v2, 1  ;;  %v157_v61 = vld [vmem:[%s1804_s0 + $0xa0] sm:$0xff]  ;;  %v158_v62 = vld [vmem:[%s1804_s0 + $0xa8] sm:$0xff] }
  0x46   : > { %v642_v10 = vrot.slane %v385_v2, 2  ;;  %976 = vst.msk [vmem:[#allocation2 + $0x88] sm:$0xff] %vm957_vm0, %v938_v3  ;;  %v585_v11 = vadd.f32 %v496_v7, %v344_v47  ;;  %v851_v12 = vrot.slane %v755_v4, 3  ;;  %v306_v15 = vsel %vm201_vm1, 0.0, %v226_v5 }
  0x47   : > { %v228_v14 = vsel %vm201_vm1, %v226_v5, %v227_v6  ;;  %v498_v13 = vsel %vm458_vm2, %v495_v63, %v497_v9  ;;  %v346_v17 = vmul.f32 0.125, %v306_v15  ;;  %v386_v22 = vmul.f32 0.375, %v306_v15 }
  0x48   : > { %v643_v16 = vsel %vm603_vm3, %v640_v0, %v642_v10  ;;  %v347_v18 = vmul.f32 0.125, %v228_v14  ;;  %v730_v19 = vadd.f32 %v641_v8, %v585_v11  ;;  %v586_v20 = vadd.f32 %v498_v13, %v345_v48 }
  0x49   : > { %v852_v21 = vsel %vm812_vm4, %v849_v55, %v851_v12  ;;  %v387_v23 = vmul.f32 0.375, %v228_v14  ;;  %v853_v24 = vrot.slane %v346_v17, 3  ;;  %v322_v26 = vsel %vm201_vm1, %v227_v6, 0.0 }
  0x4a   : > { %v854_v25 = vrot.slane %v347_v18, 3  ;;  %v939_v29 = vadd.f32 %v850_v1, %v730_v19  ;;  %v731_v30 = vadd.f32 %v643_v16, %v586_v20  ;;  %v499_v31 = vrot.slane %v386_v22, 1 }
  0x4b   : > { %v644_v32 = vrot.slane %v386_v22, 2  ;;  %v500_v33 = vrot.slane %v387_v23, 1  ;;  %v645_v34 = vrot.slane %v387_v23, 2  ;;  %v388_v36 = vmul.f32 0.375, %v322_v26 }
  0x4c   : > { %v855_v35 = vsel %vm812_vm4, %v853_v24, %v854_v25  ;;  %977 = vst.msk [vmem:[#allocation2 + $0x90] sm:$0xff] %vm957_vm0, %v939_v29  ;;  %v940_v37 = vadd.f32 %v852_v21, %v731_v30  ;;  %v756_v38 = vmul.f32 0.125, %v322_v26  ;;  %v229_v39 = vrot.slane %v155_v27, 6 }
  0x4d   : > { %v230_v40 = vrot.slane %v156_v28, 6  ;;  %v501_v41 = vsel %vm458_vm2, %v499_v31, %v500_v33  ;;  %v646_v42 = vsel %vm603_vm3, %v644_v32, %v645_v34  ;;  %v502_v43 = vrot.slane %v388_v36, 1  ;;  %v159_v31 = vld [vmem:[%s1804_s0 + $0xb0] sm:$0xff]  ;;  %v160_v32 = vld [vmem:[%s1804_s0 + $0xb8] sm:$0xff] }
  0x4e   : > { %v647_v44 = vrot.slane %v388_v36, 2  ;;  %978 = vst.msk [vmem:[#allocation2 + $0x98] sm:$0xff] %vm957_vm0, %v940_v37  ;;  %v587_v45 = vadd.f32 %v501_v41, %v346_v17  ;;  %v856_v46 = vrot.slane %v756_v38, 3  ;;  %v307_v48 = vsel %vm201_vm1, 0.0, %v229_v39 }
  0x4f   : > { %v231_v47 = vsel %vm201_vm1, %v229_v39, %v230_v40  ;;  %v503_v49 = vsel %vm458_vm2, %v500_v33, %v502_v43  ;;  %v348_v51 = vmul.f32 0.125, %v307_v48  ;;  %v389_v56 = vmul.f32 0.375, %v307_v48 }
  0x50   : > { %v648_v50 = vsel %vm603_vm3, %v645_v34, %v647_v44  ;;  %v349_v52 = vmul.f32 0.125, %v231_v47  ;;  %v732_v53 = vadd.f32 %v646_v42, %v587_v45  ;;  %v588_v54 = vadd.f32 %v503_v49, %v347_v18 }
  0x51   : > { %v857_v55 = vsel %vm812_vm4, %v854_v25, %v856_v46  ;;  %v390_v57 = vmul.f32 0.375, %v231_v47  ;;  %v858_v58 = vrot.slane %v348_v51, 3  ;;  %v323_v60 = vsel %vm201_vm1, %v230_v40, 0.0 }
  0x52   : > { %v859_v59 = vrot.slane %v349_v52, 3  ;;  %v941_v63 = vadd.f32 %v855_v35, %v732_v53  ;;  %v733_v0 = vadd.f32 %v648_v50, %v588_v54  ;;  %v504_v1 = vrot.slane %v389_v56, 1 }
  0x53   : > { %v649_v2 = vrot.slane %v389_v56, 2  ;;  %v505_v3 = vrot.slane %v390_v57, 1  ;;  %v650_v4 = vrot.slane %v390_v57, 2  ;;  %v391_v6 = vmul.f32 0.375, %v323_v60 }
  0x54   : > { %v860_v5 = vsel %vm812_vm4, %v858_v58, %v859_v59  ;;  %979 = vst.msk [vmem:[#allocation2 + $0xa0] sm:$0xff] %vm957_vm0, %v941_v63  ;;  %v942_v7 = vadd.f32 %v857_v55, %v733_v0  ;;  %v757_v8 = vmul.f32 0.125, %v323_v60  ;;  %v232_v9 = vrot.slane %v157_v61, 6 }
  0x55   : > { %v233_v10 = vrot.slane %v158_v62, 6  ;;  %v506_v11 = vsel %vm458_vm2, %v504_v1, %v505_v3  ;;  %v651_v12 = vsel %vm603_vm3, %v649_v2, %v650_v4  ;;  %v507_v14 = vrot.slane %v391_v6, 1  ;;  %v161_v1 = vld [vmem:[%s1804_s0 + $0xc0] sm:$0xff]  ;;  %v162_v2 = vld [vmem:[%s1804_s0 + $0xc8] sm:$0xff] }
  0x56   : > { %v652_v15 = vrot.slane %v391_v6, 2  ;;  %980 = vst.msk [vmem:[#allocation2 + $0xa8] sm:$0xff] %vm957_vm0, %v942_v7  ;;  %v589_v13 = vadd.f32 %v506_v11, %v348_v51  ;;  %v861_v16 = vrot.slane %v757_v8, 3  ;;  %v308_v18 = vsel %vm201_vm1, 0.0, %v232_v9 }
  0x57   : > { %v234_v17 = vsel %vm201_vm1, %v232_v9, %v233_v10  ;;  %v508_v19 = vsel %vm458_vm2, %v505_v3, %v507_v14  ;;  %v350_v21 = vmul.f32 0.125, %v308_v18  ;;  %v392_v26 = vmul.f32 0.375, %v308_v18 }
  0x58   : > { %v653_v20 = vsel %vm603_vm3, %v650_v4, %v652_v15  ;;  %v351_v22 = vmul.f32 0.125, %v234_v17  ;;  %v734_v23 = vadd.f32 %v651_v12, %v589_v13  ;;  %v590_v24 = vadd.f32 %v508_v19, %v349_v52 }
  0x59   : > { %v862_v25 = vsel %vm812_vm4, %v859_v59, %v861_v16  ;;  %v393_v27 = vmul.f32 0.375, %v234_v17  ;;  %v863_v28 = vrot.slane %v350_v21, 3  ;;  %v324_v30 = vsel %vm201_vm1, %v233_v10, 0.0 }
  0x5a   : > { %v864_v29 = vrot.slane %v351_v22, 3  ;;  %v943_v33 = vadd.f32 %v860_v5, %v734_v23  ;;  %v735_v34 = vadd.f32 %v653_v20, %v590_v24  ;;  %v509_v35 = vrot.slane %v392_v26, 1 }
  0x5b   : > { %v654_v36 = vrot.slane %v392_v26, 2  ;;  %v510_v37 = vrot.slane %v393_v27, 1  ;;  %v655_v38 = vrot.slane %v393_v27, 2  ;;  %v394_v40 = vmul.f32 0.375, %v324_v30 }
  0x5c   : > { %v865_v39 = vsel %vm812_vm4, %v863_v28, %v864_v29  ;;  %981 = vst.msk [vmem:[#allocation2 + $0xb0] sm:$0xff] %vm957_vm0, %v943_v33  ;;  %v944_v41 = vadd.f32 %v862_v25, %v735_v34  ;;  %v758_v42 = vmul.f32 0.125, %v324_v30  ;;  %v235_v43 = vrot.slane %v159_v31, 6 }
  0x5d   : > { %v236_v44 = vrot.slane %v160_v32, 6  ;;  %v511_v45 = vsel %vm458_vm2, %v509_v35, %v510_v37  ;;  %v656_v46 = vsel %vm603_vm3, %v654_v36, %v655_v38  ;;  %v512_v47 = vrot.slane %v394_v40, 1  ;;  %v163_v35 = vld [vmem:[%s1804_s0 + $0xd0] sm:$0xff]  ;;  %v164_v36 = vld [vmem:[%s1804_s0 + $0xd8] sm:$0xff] }
  0x5e   : > { %v657_v48 = vrot.slane %v394_v40, 2  ;;  %982 = vst.msk [vmem:[#allocation2 + $0xb8] sm:$0xff] %vm957_vm0, %v944_v41  ;;  %v591_v49 = vadd.f32 %v511_v45, %v350_v21  ;;  %v866_v50 = vrot.slane %v758_v42, 3  ;;  %v309_v52 = vsel %vm201_vm1, 0.0, %v235_v43 }
  0x5f   : > { %v237_v51 = vsel %vm201_vm1, %v235_v43, %v236_v44  ;;  %v513_v53 = vsel %vm458_vm2, %v510_v37, %v512_v47  ;;  %v352_v55 = vmul.f32 0.125, %v309_v52  ;;  %v395_v60 = vmul.f32 0.375, %v309_v52 }
  0x60   : > { %v658_v54 = vsel %vm603_vm3, %v655_v38, %v657_v48  ;;  %v353_v56 = vmul.f32 0.125, %v237_v51  ;;  %v736_v57 = vadd.f32 %v656_v46, %v591_v49  ;;  %v592_v58 = vadd.f32 %v513_v53, %v351_v22 }
  0x61   : > { %v867_v59 = vsel %vm812_vm4, %v864_v29, %v866_v50  ;;  %v396_v61 = vmul.f32 0.375, %v237_v51  ;;  %v868_v62 = vrot.slane %v352_v55, 3  ;;  %v325_v0 = vsel %vm201_vm1, %v236_v44, 0.0 }
  0x62   : > { %v869_v63 = vrot.slane %v353_v56, 3  ;;  %v945_v3 = vadd.f32 %v865_v39, %v736_v57  ;;  %v737_v4 = vadd.f32 %v658_v54, %v592_v58  ;;  %v514_v5 = vrot.slane %v395_v60, 1 }
  0x63   : > { %v659_v6 = vrot.slane %v395_v60, 2  ;;  %v515_v7 = vrot.slane %v396_v61, 1  ;;  %v660_v8 = vrot.slane %v396_v61, 2  ;;  %v397_v10 = vmul.f32 0.375, %v325_v0 }
  0x64   : > { %v870_v9 = vsel %vm812_vm4, %v868_v62, %v869_v63  ;;  %983 = vst.msk [vmem:[#allocation2 + $0xc0] sm:$0xff] %vm957_vm0, %v945_v3  ;;  %v946_v11 = vadd.f32 %v867_v59, %v737_v4  ;;  %v759_v12 = vmul.f32 0.125, %v325_v0  ;;  %v238_v14 = vrot.slane %v161_v1, 6 }
  0x65   : > { %v239_v15 = vrot.slane %v162_v2, 6  ;;  %v516_v13 = vsel %vm458_vm2, %v514_v5, %v515_v7  ;;  %v661_v16 = vsel %vm603_vm3, %v659_v6, %v660_v8  ;;  %v517_v17 = vrot.slane %v397_v10, 1  ;;  %v165_v5 = vld [vmem:[%s1804_s0 + $0xe0] sm:$0xff]  ;;  %v166_v6 = vld [vmem:[%s1804_s0 + $0xe8] sm:$0xff] }
  0x66   : > { %v662_v18 = vrot.slane %v397_v10, 2  ;;  %984 = vst.msk [vmem:[#allocation2 + $0xc8] sm:$0xff] %vm957_vm0, %v946_v11  ;;  %v593_v19 = vadd.f32 %v516_v13, %v352_v55  ;;  %v871_v20 = vrot.slane %v759_v12, 3  ;;  %v310_v22 = vsel %vm201_vm1, 0.0, %v238_v14 }
  0x67   : > { %v240_v21 = vsel %vm201_vm1, %v238_v14, %v239_v15  ;;  %v518_v23 = vsel %vm458_vm2, %v515_v7, %v517_v17  ;;  %v354_v25 = vmul.f32 0.125, %v310_v22  ;;  %v398_v30 = vmul.f32 0.375, %v310_v22 }
  0x68   : > { %v663_v24 = vsel %vm603_vm3, %v660_v8, %v662_v18  ;;  %v355_v26 = vmul.f32 0.125, %v240_v21  ;;  %v738_v27 = vadd.f32 %v661_v16, %v593_v19  ;;  %v594_v28 = vadd.f32 %v518_v23, %v353_v56 }
  0x69   : > { %v872_v29 = vsel %vm812_vm4, %v869_v63, %v871_v20  ;;  %v399_v31 = vmul.f32 0.375, %v240_v21  ;;  %v873_v32 = vrot.slane %v354_v25, 3  ;;  %v326_v34 = vsel %vm201_vm1, %v239_v15, 0.0 }
  0x6a   : > { %v874_v33 = vrot.slane %v355_v26, 3  ;;  %v947_v37 = vadd.f32 %v870_v9, %v738_v27  ;;  %v739_v38 = vadd.f32 %v663_v24, %v594_v28  ;;  %v519_v39 = vrot.slane %v398_v30, 1 }
  0x6b   : > { %v664_v40 = vrot.slane %v398_v30, 2  ;;  %v520_v41 = vrot.slane %v399_v31, 1  ;;  %v665_v42 = vrot.slane %v399_v31, 2  ;;  %v400_v44 = vmul.f32 0.375, %v326_v34 }
  0x6c   : > { %v875_v43 = vsel %vm812_vm4, %v873_v32, %v874_v33  ;;  %985 = vst.msk [vmem:[#allocation2 + $0xd0] sm:$0xff] %vm957_vm0, %v947_v37  ;;  %v948_v45 = vadd.f32 %v872_v29, %v739_v38  ;;  %v760_v46 = vmul.f32 0.125, %v326_v34  ;;  %v241_v47 = vrot.slane %v163_v35, 6 }
  0x6d   : > { %v242_v48 = vrot.slane %v164_v36, 6  ;;  %v521_v49 = vsel %vm458_vm2, %v519_v39, %v520_v41  ;;  %v666_v50 = vsel %vm603_vm3, %v664_v40, %v665_v42  ;;  %v522_v51 = vrot.slane %v400_v44, 1  ;;  %v167_v39 = vld [vmem:[%s1804_s0 + $0xf0] sm:$0xff]  ;;  %v168_v40 = vld [vmem:[%s1804_s0 + $0xf8] sm:$0xff] }
  0x6e   : > { %v667_v52 = vrot.slane %v400_v44, 2  ;;  %986 = vst.msk [vmem:[#allocation2 + $0xd8] sm:$0xff] %vm957_vm0, %v948_v45  ;;  %v595_v53 = vadd.f32 %v521_v49, %v354_v25  ;;  %v876_v54 = vrot.slane %v760_v46, 3  ;;  %v311_v56 = vsel %vm201_vm1, 0.0, %v241_v47 }
  0x6f   : > { %v243_v55 = vsel %vm201_vm1, %v241_v47, %v242_v48  ;;  %v523_v57 = vsel %vm458_vm2, %v520_v41, %v522_v51  ;;  %v356_v59 = vmul.f32 0.125, %v311_v56  ;;  %v401_v0 = vmul.f32 0.375, %v311_v56 }
  0x70   : > { %v668_v58 = vsel %vm603_vm3, %v665_v42, %v667_v52  ;;  %v357_v60 = vmul.f32 0.125, %v243_v55  ;;  %v740_v61 = vadd.f32 %v666_v50, %v595_v53  ;;  %v596_v62 = vadd.f32 %v523_v57, %v355_v26 }
  0x71   : > { %v877_v63 = vsel %vm812_vm4, %v874_v33, %v876_v54  ;;  %v402_v1 = vmul.f32 0.375, %v243_v55  ;;  %v878_v2 = vrot.slane %v356_v59, 3  ;;  %v327_v4 = vsel %vm201_vm1, %v242_v48, 0.0 }
  0x72   : > { %v879_v3 = vrot.slane %v357_v60, 3  ;;  %v949_v7 = vadd.f32 %v875_v43, %v740_v61  ;;  %v741_v8 = vadd.f32 %v668_v58, %v596_v62  ;;  %v524_v9 = vrot.slane %v401_v0, 1 }
  0x73   : > { %v669_v10 = vrot.slane %v401_v0, 2  ;;  %v525_v11 = vrot.slane %v402_v1, 1  ;;  %v670_v12 = vrot.slane %v402_v1, 2  ;;  %v403_v15 = vmul.f32 0.375, %v327_v4 }
  0x74   : > { %v880_v14 = vsel %vm812_vm4, %v878_v2, %v879_v3  ;;  %987 = vst.msk [vmem:[#allocation2 + $0xe0] sm:$0xff] %vm957_vm0, %v949_v7  ;;  %v950_v13 = vadd.f32 %v877_v63, %v741_v8  ;;  %v761_v16 = vmul.f32 0.125, %v327_v4  ;;  %v244_v17 = vrot.slane %v165_v5, 6 }
  0x75   : > { %v245_v18 = vrot.slane %v166_v6, 6  ;;  %v526_v19 = vsel %vm458_vm2, %v524_v9, %v525_v11  ;;  %v671_v20 = vsel %vm603_vm3, %v669_v10, %v670_v12  ;;  %v527_v21 = vrot.slane %v403_v15, 1 }
  0x76   : > { %v672_v22 = vrot.slane %v403_v15, 2  ;;  %988 = vst.msk [vmem:[#allocation2 + $0xe8] sm:$0xff] %vm957_vm0, %v950_v13  ;;  %v597_v23 = vadd.f32 %v526_v19, %v356_v59  ;;  %v881_v24 = vrot.slane %v761_v16, 3  ;;  %v312_v26 = vsel %vm201_vm1, 0.0, %v244_v17 }
  0x77   : > { %v246_v25 = vsel %vm201_vm1, %v244_v17, %v245_v18  ;;  %v528_v27 = vsel %vm458_vm2, %v525_v11, %v527_v21  ;;  %v358_v29 = vmul.f32 0.125, %v312_v26  ;;  %v404_v34 = vmul.f32 0.375, %v312_v26 }
  0x78   : > { %v673_v28 = vsel %vm603_vm3, %v670_v12, %v672_v22  ;;  %v359_v30 = vmul.f32 0.125, %v246_v25  ;;  %v742_v31 = vadd.f32 %v671_v20, %v597_v23  ;;  %v598_v32 = vadd.f32 %v528_v27, %v357_v60 }
  0x79   : > { %v882_v33 = vsel %vm812_vm4, %v879_v3, %v881_v24  ;;  %v405_v35 = vmul.f32 0.375, %v246_v25  ;;  %v883_v36 = vrot.slane %v358_v29, 3  ;;  %v328_v38 = vsel %vm201_vm1, %v245_v18, 0.0 }
  0x7a   : > { %v884_v37 = vrot.slane %v359_v30, 3  ;;  %v951_v41 = vadd.f32 %v880_v14, %v742_v31  ;;  %v743_v42 = vadd.f32 %v673_v28, %v598_v32  ;;  %v529_v43 = vrot.slane %v404_v34, 1 }
  0x7b   : > { %v674_v44 = vrot.slane %v404_v34, 2  ;;  %v530_v45 = vrot.slane %v405_v35, 1  ;;  %v675_v46 = vrot.slane %v405_v35, 2  ;;  %v406_v48 = vmul.f32 0.375, %v328_v38 }
  0x7c   : > { %v885_v47 = vsel %vm812_vm4, %v883_v36, %v884_v37  ;;  %989 = vst.msk [vmem:[#allocation2 + $0xf0] sm:$0xff] %vm957_vm0, %v951_v41  ;;  %v952_v49 = vadd.f32 %v882_v33, %v743_v42  ;;  %v762_v50 = vmul.f32 0.125, %v328_v38  ;;  %v247_v51 = vrot.slane %v167_v39, 6 }
  0x7d   : > { %v248_v52 = vrot.slane %v168_v40, 6  ;;  %v531_v53 = vsel %vm458_vm2, %v529_v43, %v530_v45  ;;  %v676_v54 = vsel %vm603_vm3, %v674_v44, %v675_v46  ;;  %v532_v55 = vrot.slane %v406_v48, 1 }
  0x7e   : > { %v677_v56 = vrot.slane %v406_v48, 2  ;;  %990 = vst.msk [vmem:[#allocation2 + $0xf8] sm:$0xff] %vm957_vm0, %v952_v49  ;;  %v599_v57 = vadd.f32 %v531_v53, %v358_v29  ;;  %v886_v58 = vrot.slane %v762_v50, 3  ;;  %v313_v60 = vsel %vm201_vm1, 0.0, %v247_v51 }
  0x7f   : > { %v249_v59 = vsel %vm201_vm1, %v247_v51, %v248_v52  ;;  %v533_v61 = vsel %vm458_vm2, %v530_v45, %v532_v55  ;;  %v360_v63 = vmul.f32 0.125, %v313_v60  ;;  %v407_v3 = vmul.f32 0.375, %v313_v60 }
  0x80   : > { %v678_v62 = vsel %vm603_vm3, %v675_v46, %v677_v56  ;;  %v361_v0 = vmul.f32 0.125, %v249_v59  ;;  %v744_v1 = vadd.f32 %v676_v54, %v599_v57  ;;  %v600_v2 = vadd.f32 %v533_v61, %v359_v30 }
  0x81   : > { %v887_v4 = vsel %vm812_vm4, %v884_v37, %v886_v58  ;;  %v408_v5 = vmul.f32 0.375, %v249_v59  ;;  %v888_v6 = vrot.slane %v360_v63, 3  ;;  %v329_v7 = vsel %vm201_vm1, %v248_v52, 0.0 }
  0x82   : > { %v953_v8 = vadd.f32 %v885_v47, %v744_v1  ;;  %v745_v9 = vadd.f32 %v678_v62, %v600_v2  ;;  %v534_v10 = vrot.slane %v407_v3, 1  ;;  %v679_v11 = vrot.slane %v407_v3, 2 }
  0x83   : > { %v535_v12 = vrot.slane %v408_v5, 1  ;;  %v680_v14 = vrot.slane %v408_v5, 2  ;;  %v889_v15 = vrot.slane %v361_v0, 3  ;;  %v409_v13 = vmul.f32 0.375, %v329_v7 }
  0x84   : > { %991 = vst.msk [vmem:[#allocation2 + $0x100] sm:$0xff] %vm957_vm0, %v953_v8  ;;  %v954_v16 = vadd.f32 %v887_v4, %v745_v9  ;;  %v763_v17 = vmul.f32 0.125, %v329_v7 }
  0x85   : > { %v536_v18 = vsel %vm458_vm2, %v534_v10, %v535_v12  ;;  %v681_v19 = vsel %vm603_vm3, %v679_v11, %v680_v14  ;;  %v537_v20 = vrot.slane %v409_v13, 1  ;;  %v682_v21 = vrot.slane %v409_v13, 2 }
  0x86   : > { %992 = vst.msk [vmem:[#allocation2 + $0x108] sm:$0xff] %vm957_vm0, %v954_v16  ;;  %v601_v22 = vadd.f32 %v536_v18, %v360_v63  ;;  %v891_v23 = vrot.slane %v763_v17, 3  ;;  %v890_v24 = vsel %vm812_vm4, %v888_v6, %v889_v15 }
  0x87   : > { %v538_v25 = vsel %vm458_vm2, %v535_v12, %v537_v20  ;;  %v683_v26 = vsel %vm603_vm3, %v680_v14, %v682_v21 }
  0x88   : > { %v746_v27 = vadd.f32 %v681_v19, %v601_v22  ;;  %v602_v28 = vadd.f32 %v538_v25, %v361_v0  ;;  %v892_v29 = vsel %vm812_vm4, %v889_v15, %v891_v23 }
  0x8a   : > { %v955_v30 = vadd.f32 %v890_v24, %v746_v27  ;;  %v747_v31 = vadd.f32 %v683_v26, %v602_v28 }
  0x8c   : > { %993 = vst.msk [vmem:[#allocation2 + $0x110] sm:$0xff] %vm957_vm0, %v955_v30  ;;  %v956_v32 = vadd.f32 %v892_v29, %v747_v31 }
  0x8e   : > { %994 = vst.msk [vmem:[#allocation2 + $0x118] sm:$0xff] %vm957_vm0, %v956_v32 }
  0x95   : > { %v1001_v33 = vld [vmem:[%s1733_s26] sm:$0xff]  ;;  %v1312_v34 = vld [vmem:[%s1733_s26 + $0x10] sm:$0xff]  ;;  %v1002_v40 = vld [vmem:[%s1733_s26 + $0x8] sm:$0xff] }
  0x96   : > { %v1330_v35 = vld [vmem:[%s1733_s26 + $0x20] sm:$0xff]  ;;  %v1017_v36 = vmul.f32 0.125, %v1001_v33  ;;  %v1052_v37 = vmul.f32 0.375, %v1312_v34  ;;  %v1348_v39 = vld [vmem:[%s1733_s26 + $0x30] sm:$0xff]  ;;  %v1313_v41 = vld [vmem:[%s1733_s26 + $0x18] sm:$0xff]  ;;  %v1018_v42 = vmul.f32 0.125, %v1002_v40 }
  0x97   : > { %v1103_v38 = vmul.f32 0.375, %v1330_v35  ;;  %v1053_v43 = vmul.f32 0.375, %v1313_v41  ;;  %v1331_v44 = vld [vmem:[%s1733_s26 + $0x28] sm:$0xff]  ;;  %v1349_v45 = vld [vmem:[%s1733_s26 + $0x38] sm:$0xff]  ;;  %v1019_v46 = vmul.f32 0.125, %v1312_v34  ;;  %v1154_v48 = vmul.f32 0.125, %v1348_v39 }
  0x98   : > { %v1068_v47 = vadd.f32 %v1052_v37, %v1017_v36  ;;  %v1104_v49 = vmul.f32 0.375, %v1331_v44  ;;  %v1105_v50 = vmul.f32 0.375, %v1348_v39  ;;  %v1350_v51 = vld [vmem:[%s1733_s26 + $0x40] sm:$0xff]  ;;  %v1155_v53 = vmul.f32 0.125, %v1349_v45  ;;  %v1351_v56 = vld [vmem:[%s1733_s26 + $0x48] sm:$0xff]  ;;  %v1352_v1 = vld [vmem:[%s1733_s26 + $0x50] sm:$0xff] }
  0x99   : > { %v1069_v52 = vadd.f32 %v1053_v43, %v1018_v42  ;;  %v1070_v54 = vadd.f32 %v1103_v38, %v1019_v46  ;;  %v1020_v55 = vmul.f32 0.125, %v1313_v41  ;;  %v1156_v58 = vmul.f32 0.125, %v1350_v51  ;;  %v1353_v6 = vld [vmem:[%s1733_s26 + $0x58] sm:$0xff]  ;;  %v1354_v11 = vld [vmem:[%s1733_s26 + $0x60] sm:$0xff]  ;;  %v1355_v16 = vld [vmem:[%s1733_s26 + $0x68] sm:$0xff] }
  0x9a   : > { %v1119_v57 = vadd.f32 %v1103_v38, %v1068_v47  ;;  %v1106_v59 = vmul.f32 0.375, %v1349_v45  ;;  %v1021_v60 = vmul.f32 0.125, %v1330_v35  ;;  %v1107_v0 = vmul.f32 0.375, %v1350_v51  ;;  %v1356_v25 = vld [vmem:[%s1733_s26 + $0x70] sm:$0xff]  ;;  %v1357_v30 = vld [vmem:[%s1733_s26 + $0x78] sm:$0xff]  ;;  %v1358_v35 = vld [vmem:[%s1733_s26 + $0x80] sm:$0xff] }
  0x9b   : > { %v1120_v61 = vadd.f32 %v1104_v49, %v1069_v52  ;;  %v1121_v62 = vadd.f32 %v1105_v50, %v1070_v54  ;;  %v1071_v63 = vadd.f32 %v1104_v49, %v1020_v55  ;;  %v1157_v3 = vmul.f32 0.125, %v1351_v56  ;;  %v1360_v49 = vld [vmem:[%s1733_s26 + $0x90] sm:$0xff]  ;;  %v1361_v54 = vld [vmem:[%s1733_s26 + $0x98] sm:$0xff] }
  0x9c   : > { %v1170_v2 = vadd.f32 %v1154_v48, %v1119_v57  ;;  %v1072_v4 = vadd.f32 %v1105_v50, %v1021_v60  ;;  %v1022_v5 = vmul.f32 0.125, %v1331_v44  ;;  %v1108_v10 = vmul.f32 0.375, %v1351_v56  ;;  %v1359_v44 = vld [vmem:[%s1733_s26 + $0x88] sm:$0xff] }
  0x9d   : > { %v1171_v7 = vadd.f32 %v1155_v53, %v1120_v61  ;;  %v1172_v8 = vadd.f32 %v1156_v58, %v1121_v62  ;;  %v1122_v9 = vadd.f32 %v1106_v59, %v1071_v63  ;;  %v1158_v14 = vmul.f32 0.125, %v1352_v1  ;;  %v1362_v63 = vld [vmem:[%s1733_s26 + $0xa0] sm:$0xff] }
  0x9e   : > { %1186 = vst.msk [vmem:[%s1749_s29] sm:$0xff] %vm957_vm0, %v1170_v2  ;;  %v1123_v12 = vadd.f32 %v1107_v0, %v1072_v4  ;;  %v1073_v15 = vadd.f32 %v1106_v59, %v1022_v5  ;;  %v1074_v13 = vadd.f32 %v1154_v48, %v1107_v0  ;;  %v1159_v18 = vmul.f32 0.125, %v1353_v6  ;;  %v1363_v4 = vld [vmem:[%s1733_s26 + $0xa8] sm:$0xff] }
  0x9f   : > { %1187 = vst.msk [vmem:[%s1749_s29 + $0x8] sm:$0xff] %vm957_vm0, %v1171_v7  ;;  %1188 = vst.msk [vmem:[%s1749_s29 + $0x10] sm:$0xff] %vm957_vm0, %v1172_v8  ;;  %v1173_v17 = vadd.f32 %v1157_v3, %v1122_v9  ;;  %v1109_v19 = vmul.f32 0.375, %v1352_v1  ;;  %v1075_v20 = vadd.f32 %v1155_v53, %v1108_v10  ;;  %v1160_v23 = vmul.f32 0.125, %v1354_v11 }
  0xa0   : > { %v1174_v21 = vadd.f32 %v1158_v14, %v1123_v12  ;;  %v1124_v22 = vadd.f32 %v1108_v10, %v1073_v15  ;;  %v1110_v24 = vmul.f32 0.375, %v1353_v6  ;;  %v1161_v27 = vmul.f32 0.125, %v1355_v16 }
  0xa1   : > { %1189 = vst.msk [vmem:[%s1749_s29 + $0x18] sm:$0xff] %vm957_vm0, %v1173_v17  ;;  %v1125_v26 = vadd.f32 %v1109_v19, %v1074_v13  ;;  %v1076_v28 = vadd.f32 %v1156_v58, %v1109_v19  ;;  %v1111_v29 = vmul.f32 0.375, %v1354_v11  ;;  %v1112_v34 = vmul.f32 0.375, %v1355_v16 }
  0xa2   : > { %1190 = vst.msk [vmem:[%s1749_s29 + $0x20] sm:$0xff] %vm957_vm0, %v1174_v21  ;;  %v1175_v31 = vadd.f32 %v1159_v18, %v1124_v22  ;;  %v1126_v32 = vadd.f32 %v1110_v24, %v1075_v20  ;;  %v1077_v33 = vadd.f32 %v1157_v3, %v1110_v24  ;;  %v1162_v38 = vmul.f32 0.125, %v1356_v25 }
  0xa3   : > { %v1176_v36 = vadd.f32 %v1160_v23, %v1125_v26  ;;  %v1127_v37 = vadd.f32 %v1111_v29, %v1076_v28  ;;  %v1078_v39 = vadd.f32 %v1158_v14, %v1111_v29  ;;  %v1163_v42 = vmul.f32 0.125, %v1357_v30 }
  0xa4   : > { %1191 = vst.msk [vmem:[%s1749_s29 + $0x28] sm:$0xff] %vm957_vm0, %v1175_v31  ;;  %v1177_v40 = vadd.f32 %v1161_v27, %v1126_v32  ;;  %v1128_v41 = vadd.f32 %v1112_v34, %v1077_v33  ;;  %v1113_v43 = vmul.f32 0.375, %v1356_v25  ;;  %v1164_v46 = vmul.f32 0.125, %v1358_v35 }
  0xa5   : > { %1192 = vst.msk [vmem:[%s1749_s29 + $0x30] sm:$0xff] %vm957_vm0, %v1176_v36  ;;  %v1178_v45 = vadd.f32 %v1162_v38, %v1127_v37  ;;  %v1079_v47 = vadd.f32 %v1159_v18, %v1112_v34  ;;  %v1114_v48 = vmul.f32 0.375, %v1357_v30  ;;  %v1115_v53 = vmul.f32 0.375, %v1358_v35 }
  0xa6   : > { %1193 = vst.msk [vmem:[%s1749_s29 + $0x38] sm:$0xff] %vm957_vm0, %v1177_v40  ;;  %v1179_v50 = vadd.f32 %v1163_v42, %v1128_v41  ;;  %v1129_v51 = vadd.f32 %v1113_v43, %v1078_v39  ;;  %v1080_v52 = vadd.f32 %v1160_v23, %v1113_v43  ;;  %v1165_v56 = vmul.f32 0.125, %v1359_v44 }
  0xa7   : > { %1194 = vst.msk [vmem:[%s1749_s29 + $0x40] sm:$0xff] %vm957_vm0, %v1178_v45  ;;  %v1130_v55 = vadd.f32 %v1114_v48, %v1079_v47  ;;  %v1081_v57 = vadd.f32 %v1161_v27, %v1114_v48  ;;  %v1116_v58 = vmul.f32 0.375, %v1359_v44  ;;  %v1166_v61 = vmul.f32 0.125, %v1360_v49 }
  0xa8   : > { %1195 = vst.msk [vmem:[%s1749_s29 + $0x48] sm:$0xff] %vm957_vm0, %v1179_v50  ;;  %v1180_v59 = vadd.f32 %v1164_v46, %v1129_v51  ;;  %v1131_v60 = vadd.f32 %v1115_v53, %v1080_v52  ;;  %v1082_v62 = vadd.f32 %v1162_v38, %v1115_v53  ;;  %v1167_v2 = vmul.f32 0.125, %v1361_v54 }
  0xa9   : > { %v1181_v0 = vadd.f32 %v1165_v56, %v1130_v55  ;;  %v1132_v1 = vadd.f32 %v1116_v58, %v1081_v57  ;;  %v1117_v3 = vmul.f32 0.375, %v1360_v49  ;;  %v1083_v6 = vadd.f32 %v1163_v42, %v1116_v58 }
  0xaa   : > { %1196 = vst.msk [vmem:[%s1749_s29 + $0x50] sm:$0xff] %vm957_vm0, %v1180_v59  ;;  %v1182_v5 = vadd.f32 %v1166_v61, %v1131_v60  ;;  %v1118_v7 = vmul.f32 0.375, %v1361_v54  ;;  %v1168_v10 = vmul.f32 0.125, %v1362_v63  ;;  %v1169_v12 = vmul.f32 0.125, %v1363_v4 }
  0xab   : > { %1197 = vst.msk [vmem:[%s1749_s29 + $0x58] sm:$0xff] %vm957_vm0, %v1181_v0  ;;  %v1183_v8 = vadd.f32 %v1167_v2, %v1132_v1  ;;  %v1133_v9 = vadd.f32 %v1117_v3, %v1082_v62 }
  0xac   : > { %1198 = vst.msk [vmem:[%s1749_s29 + $0x60] sm:$0xff] %vm957_vm0, %v1182_v5  ;;  %v1134_v11 = vadd.f32 %v1118_v7, %v1083_v6 }
  0xad   : > { %1199 = vst.msk [vmem:[%s1749_s29 + $0x68] sm:$0xff] %vm957_vm0, %v1183_v8  ;;  %v1184_v14 = vadd.f32 %v1168_v10, %v1133_v9 }
  0xae   : > { %v1185_v15 = vadd.f32 %v1169_v12, %v1134_v11 }
  0xaf   : > { %1200 = vst.msk [vmem:[%s1749_s29 + $0x70] sm:$0xff] %vm957_vm0, %v1184_v14 }
  0xb0   : > { %1201 = vst.msk [vmem:[%s1749_s29 + $0x78] sm:$0xff] %vm957_vm0, %v1185_v15 }
  0xb1 PF: > { %s11_s8 = sadd.s32 1, %s1418_s8   ;;  %s1806_s6 = smov %s1414_s7 }
  0xb2   : > { %p8_p5 = scmp.ge.s32.totalorder %s11_s8, 4   ;;  %s1807_s7 = smov %s1809_s9 }
  0xb4   :  { %10 = sbr.rel (!%p8_p5) target bundleno = 2 (0x2), region = 60 }

</bundles_post_ra>
